<compile_context>
chip_gen: v7x
topology: tpu7x:2x2x1
jax: 0.10.0
libtpu: 0.0.40
codegen_flags: <defaults>
</compile_context>

<pallas_src>
import functools

import jax
import jax.numpy as jnp
from jax import lax
from jax.experimental import pallas as pl
from jax.experimental.pallas import tpu as pltpu

# ----- config (small, synthetic) -----
VOCAB = 50
VOCAB_PAD = 64                       # vocab rows padded inside the weight slab
EMB = 32
FILTER_NUM = 8
KERNEL_LST = (2, 3, 4)
NUM_CLASSES = 4
SEQ_LEN = 16
BATCH = 2
LANES = 128
MAXK = max(KERNEL_LST)
KE = MAXK * EMB                      # conv contraction depth (= 128 here)
G = FILTER_NUM * len(KERNEL_LST)     # concatenated conv feature width (24)

# weight-slab row offsets (all multiples of 16 -> bf16 sublane-tile aligned)
W_CONV_OFF = 0                       # rows [0, KE)           : tap-major conv weights
W_FC_OFF = KE                        # rows [KE, KE+LANES)    : fc weights (feature-lane rows)
W_EMB_OFF = KE + LANES               # rows [KE+LANES, ...)   : embedding table
W_ROWS = KE + LANES + VOCAB_PAD


def textcnn_kernel(x_ref, w_ref, c_ref, o_ref, *, seq_len):
    """Whole TextCNN forward, one grid-less TensorCore invocation.

    x_ref : (B*L, 1)       int32  token ids (sublane = time)
    w_ref : (W_ROWS, 128)  bf16   packed weights: [conv | fc | embedding]
    c_ref : (8, 128)       f32    row0 conv bias, row1 time threshold, row2 fc bias
    o_ref : (B, C)         f32    logits
    """
    n_rows = x_ref.shape[0]          # B * L
    L = seq_len
    B = n_rows // L
    lanes = w_ref.shape[1]

    # ---- embedding lookup: one-hot (B*L, V_pad) @ table (V_pad, E) on the MXU ----
    ids = x_ref[...]                                              # (B*L, 1) int32
    iota_v = lax.broadcasted_iota(jnp.int32, (n_rows, VOCAB_PAD), 1)
    onehot = (ids == iota_v).astype(jnp.bfloat16)                 # exact in bf16
    table = w_ref[W_EMB_OFF:W_EMB_OFF + VOCAB_PAD, 0:EMB]         # (V_pad, E) bf16
    emb = jnp.dot(onehot, table,
                  preferred_element_type=jnp.float32)             # (B*L, E) f32

    # ---- conv LHS: taps stacked along the contraction axis, one bf16 cast ----
    parts = [emb]
    for j in range(1, MAXK):
        # row r -> emb[(r + j) % n_rows]; wrapped/cross-batch rows only land on
        # time steps the mask below zeroes (see invariants at top of file).
        parts.append(jnp.roll(emb, -j, axis=0))
    lhs = jnp.concatenate(parts, axis=1).astype(jnp.bfloat16)     # (B*L, KE) bf16

    # ---- all conv widths/taps as ONE K=128 bf16 MXU matmul ----
    w_conv = w_ref[W_CONV_OFF:W_CONV_OFF + KE, :]                 # (KE, 128) bf16
    acc = jnp.dot(lhs, w_conv,
                  preferred_element_type=jnp.float32)             # (B*L, 128) f32

    # ---- bias + ReLU (ReLU first so 0 is max-neutral for masked rows) ----
    z = jnp.maximum(acc + c_ref[0:1, :], 0.0)

    # ---- zero invalid time steps: t >= L - k + 1 per column (padded lanes have
    #      threshold 0 -> always zeroed); this also kills the roll wrap-around.
    t_idx = (lax.broadcasted_iota(jnp.int32, (n_rows, 1), 0) % L).astype(jnp.float32)
    z = jnp.where(t_idx < c_ref[1:2, :], z, 0.0)

    # ---- max-pool over time: static per-batch sublane-range maxes (fine at small B) ----
    pooled = [jnp.max(z[b * L:(b + 1) * L, :], axis=0, keepdims=True)
              for b in range(B)]
    feat = pooled[0] if B == 1 else jnp.concatenate(pooled, axis=0)  # (B, 128) f32

    # ---- dropout = identity at inference; final fc on the MXU ----
    w_fc = w_ref[W_FC_OFF:W_FC_OFF + lanes, :]                    # (128, 128) bf16
    logits = jnp.dot(feat.astype(jnp.bfloat16), w_fc,
                     preferred_element_type=jnp.float32)          # (B, 128) f32
    o_ref[...] = (logits + c_ref[2:3, :])[:, 0:NUM_CLASSES]


def pack_params(params):
    """Host-side layout packing; run ONCE per weight set (outside the jitted call)."""
    f32 = jnp.float32

    # conv block: row block j holds tap j of every width (kernel_lst order),
    # zero columns where a width has no tap j.
    w_conv = jnp.zeros((KE, LANES), f32)
    for j in range(MAXK):
        for ki, k in enumerate(KERNEL_LST):
            if j < k:
                w_conv = w_conv.at[j * EMB:(j + 1) * EMB,
                                   ki * FILTER_NUM:(ki + 1) * FILTER_NUM].set(
                                       params["conv_w"][ki][j])

    # fc block: rows indexed by pooled-feature lane, cols by class (zero padded).
    w_fc = jnp.zeros((LANES, LANES), f32).at[0:G, 0:NUM_CLASSES].set(params["fc_w"])

    # embedding block (rows padded to VOCAB_PAD so the one-hot matmul stays rectangular).
    w_emb = jnp.zeros((VOCAB_PAD, LANES), f32).at[0:VOCAB, 0:EMB].set(params["emb"])

    wpack = jnp.concatenate([w_conv, w_fc, w_emb], axis=0).astype(jnp.bfloat16)

    # const slab: row 0 conv bias, row 1 valid-time threshold (L - k + 1; padded
    # lanes stay 0 -> always masked), row 2 fc bias.
    bias_all = jnp.concatenate([b.reshape(-1) for b in params["conv_b"]])
    thresh = jnp.concatenate(
        [jnp.full((FILTER_NUM,), SEQ_LEN - k + 1, f32) for k in KERNEL_LST])
    const = jnp.zeros((8, LANES), f32)
    const = const.at[0, 0:G].set(bias_all)
    const = const.at[1, 0:G].set(thresh)
    const = const.at[2, 0:NUM_CLASSES].set(params["fc_b"].reshape(-1))

    return {"wpack": wpack, "const": const}


@jax.jit
def textcnn_forward(x_ids, wpack, const):
    B, L = x_ids.shape
    x_flat = x_ids.reshape(B * L, 1).astype(jnp.int32)
    kernel = functools.partial(textcnn_kernel, seq_len=L)
    vmem = pl.BlockSpec(memory_space=pltpu.MemorySpace.VMEM)
    return pl.pallas_call(
        kernel,
        out_shape=jax.ShapeDtypeStruct((B, NUM_CLASSES), jnp.float32),
        in_specs=[vmem, vmem, vmem],
        out_specs=vmem,
    )(x_flat, wpack, const)


def reference_forward(x_ids, params):
    """Pure-JAX f32 reference matching the PyTorch forward (eval mode)."""
    B, L = x_ids.shape
    emb = params["emb"][x_ids]                                         # (B, L, E)
    pooled = []
    for w, b, k in zip(params["conv_w"], params["conv_b"], KERNEL_LST):
        lout = L - k + 1
        acc = jnp.zeros((B, lout, FILTER_NUM), jnp.float32)
        for j in range(k):
            acc = acc + jnp.einsum("ble,ef->blf", emb[:, j:j + lout, :], w[j])
        acc = jax.nn.relu(acc + b[None, :, :])
        pooled.append(jnp.max(acc, axis=1))
    feat = jnp.concatenate(pooled, axis=1)
    return feat @ params["fc_w"] + params["fc_b"]


def init_params(key):
    keys = jax.random.split(key, 3 + 2 * len(KERNEL_LST))
    params = {
        "emb": jax.random.normal(keys[0], (VOCAB, EMB), jnp.float32) * 0.1,
        "conv_w": [],
        "conv_b": [],
    }
    for i, k in enumerate(KERNEL_LST):
        params["conv_w"].append(
            jax.random.normal(keys[1 + i], (k, EMB, FILTER_NUM), jnp.float32) * 0.1)
        params["conv_b"].append(
            jax.random.normal(keys[1 + len(KERNEL_LST) + i], (1, FILTER_NUM),
                              jnp.float32) * 0.1)
    fin = FILTER_NUM * len(KERNEL_LST)
    params["fc_w"] = jax.random.normal(keys[-2], (fin, NUM_CLASSES),
                                       jnp.float32) * 0.1
    params["fc_b"] = jax.random.normal(keys[-1], (1, NUM_CLASSES),
                                       jnp.float32) * 0.1
    return params


if __name__ == "__main__":
    root = jax.random.PRNGKey(0)
    k_param, k_ids = jax.random.split(root)
    params = init_params(k_param)
    packed = pack_params(params)      # packed ONCE per weight set, reused per call
    x_ids = jax.random.randint(k_ids, (BATCH, SEQ_LEN), 0, VOCAB, dtype=jnp.int32)

    out = textcnn_forward(x_ids, packed["wpack"], packed["const"])
    out = jax.block_until_ready(out)

    ref = reference_forward(x_ids, params)
    assert out.shape == (BATCH, NUM_CLASSES)
    # bf16 MXU operands with f32 accumulation -> compare at bf16-level tolerance.
    assert jnp.allclose(out, ref, atol=1e-2, rtol=1e-2), (out, ref)
    print("KERNEL_OK")
</pallas_src>

<mosaic_0001>
module attributes {stable_mosaic.version = 11 : i64} {
  func.func @textcnn_kernel(%arg0: memref<32x1xi32, #tpu.memory_space<vmem>>, %arg1: memref<320x128xbf16, #tpu.memory_space<vmem>>, %arg2: memref<8x128xf32, #tpu.memory_space<vmem>>, %arg3: memref<2x4xf32, #tpu.memory_space<vmem>>) attributes {dimension_semantics = [], scalar_prefetch = 0 : i64, scratch_operands = 0 : i64, tpu.core_type = #tpu.core_type<tc>} {
    %c0 = arith.constant 0 : index
    %c0_0 = arith.constant 0 : index
    %0 = vector.load %arg0[%c0, %c0_0] : memref<32x1xi32, #tpu.memory_space<vmem>>, vector<32x1xi32>
    %1 = tpu.iota {dimensions = array<i32: 1>} : vector<32x64xi32>
    %2 = vector.broadcast %0 : vector<32x1xi32> to vector<32x64xi32>
    %3 = arith.cmpi eq, %2, %1 : vector<32x64xi32>
    %4 = arith.extui %3 : vector<32x64xi1> to vector<32x64xi32>
    %5 = arith.sitofp %4 : vector<32x64xi32> to vector<32x64xf32>
    %6 = arith.truncf %5 : vector<32x64xf32> to vector<32x64xbf16>
    %c256 = arith.constant 256 : index
    %c0_1 = arith.constant 0 : index
    %7 = vector.load %arg1[%c256, %c0_1] : memref<320x128xbf16, #tpu.memory_space<vmem>>, vector<64x32xbf16>
    %cst = arith.constant dense<0.000000e+00> : vector<32x32xf32>
    %8 = tpu.matmul %6, %7, %cst {dimension_numbers = #tpu.dot_dimension_numbers<[1], [0], [0], [1], [0, 0, 1, 1], [], []>} : vector<32x64xbf16>, vector<64x32xbf16>, vector<32x32xf32> -> vector<32x32xf32>
    %9 = vector.extract_strided_slice %8 {offsets = [1, 0], sizes = [31, 32], strides = [1, 1]} : vector<32x32xf32> to vector<31x32xf32>
    %10 = vector.extract_strided_slice %8 {offsets = [0, 0], sizes = [1, 32], strides = [1, 1]} : vector<32x32xf32> to vector<1x32xf32>
    %11 = tpu.concatenate %9, %10 in 0 : vector<31x32xf32>, vector<1x32xf32> -> vector<32x32xf32>
    %12 = vector.extract_strided_slice %8 {offsets = [2, 0], sizes = [30, 32], strides = [1, 1]} : vector<32x32xf32> to vector<30x32xf32>
    %13 = vector.extract_strided_slice %8 {offsets = [0, 0], sizes = [2, 32], strides = [1, 1]} : vector<32x32xf32> to vector<2x32xf32>
    %14 = tpu.concatenate %12, %13 in 0 : vector<30x32xf32>, vector<2x32xf32> -> vector<32x32xf32>
    %15 = vector.extract_strided_slice %8 {offsets = [3, 0], sizes = [29, 32], strides = [1, 1]} : vector<32x32xf32> to vector<29x32xf32>
    %16 = vector.extract_strided_slice %8 {offsets = [0, 0], sizes = [3, 32], strides = [1, 1]} : vector<32x32xf32> to vector<3x32xf32>
    %17 = tpu.concatenate %15, %16 in 0 : vector<29x32xf32>, vector<3x32xf32> -> vector<32x32xf32>
    %18 = tpu.concatenate %8, %11, %14, %17 in 1 : vector<32x32xf32>, vector<32x32xf32>, vector<32x32xf32>, vector<32x32xf32> -> vector<32x128xf32>
    %19 = arith.truncf %18 : vector<32x128xf32> to vector<32x128xbf16>
    %c0_2 = arith.constant 0 : index
    %c0_3 = arith.constant 0 : index
    %20 = vector.load %arg1[%c0_2, %c0_3] : memref<320x128xbf16, #tpu.memory_space<vmem>>, vector<128x128xbf16>
    %cst_4 = arith.constant dense<0.000000e+00> : vector<32x128xf32>
    %21 = tpu.matmul %19, %20, %cst_4 {dimension_numbers = #tpu.dot_dimension_numbers<[1], [0], [0], [1], [0, 0, 1, 1], [], []>} : vector<32x128xbf16>, vector<128x128xbf16>, vector<32x128xf32> -> vector<32x128xf32>
    %c0_5 = arith.constant 0 : index
    %c0_6 = arith.constant 0 : index
    %22 = vector.load %arg2[%c0_5, %c0_6] : memref<8x128xf32, #tpu.memory_space<vmem>>, vector<1x128xf32>
    %23 = vector.broadcast %22 : vector<1x128xf32> to vector<32x128xf32>
    %24 = arith.addf %21, %23 : vector<32x128xf32>
    %cst_7 = arith.constant 0.000000e+00 : f32
    %25 = vector.broadcast %cst_7 : f32 to vector<32x128xf32>
    %26 = arith.maximumf %24, %25 : vector<32x128xf32>
    %27 = tpu.iota {dimensions = array<i32: 0>} : vector<32x1xi32>
    %c16_i32 = arith.constant 16 : i32
    %c0_i32 = arith.constant 0 : i32
    %28 = arith.cmpi eq, %c16_i32, %c0_i32 : i32
    %c1_i32 = arith.constant 1 : i32
    %29 = arith.select %28, %c1_i32, %c16_i32 : i32
    %30 = vector.broadcast %29 : i32 to vector<32x1xi32>
    %31 = arith.remsi %27, %30 : vector<32x1xi32>
    %c0_i32_8 = arith.constant 0 : i32
    %32 = vector.broadcast %c0_i32_8 : i32 to vector<32x1xi32>
    %33 = arith.cmpi ne, %31, %32 : vector<32x1xi32>
    %c0_i32_9 = arith.constant 0 : i32
    %34 = vector.broadcast %c0_i32_9 : i32 to vector<32x1xi32>
    %35 = arith.cmpi slt, %31, %34 : vector<32x1xi32>
    %c0_i32_10 = arith.constant 0 : i32
    %36 = arith.cmpi slt, %29, %c0_i32_10 : i32
    %37 = vector.broadcast %36 : i1 to vector<32x1xi1>
    %38 = vector.broadcast %37 : vector<32x1xi1> to vector<32x1xi1>
    %39 = arith.xori %35, %38 : vector<32x1xi1>
    %40 = arith.andi %39, %33 : vector<32x1xi1>
    %41 = vector.broadcast %29 : i32 to vector<32x1xi32>
    %42 = arith.addi %31, %41 : vector<32x1xi32>
    %43 = arith.select %40, %42, %31 : vector<32x1xi1>, vector<32x1xi32>
    %44 = arith.sitofp %43 : vector<32x1xi32> to vector<32x1xf32>
    %c1 = arith.constant 1 : index
    %c0_11 = arith.constant 0 : index
    %45 = vector.load %arg2[%c1, %c0_11] : memref<8x128xf32, #tpu.memory_space<vmem>>, vector<1x128xf32>
    %46 = vector.broadcast %44 : vector<32x1xf32> to vector<32x128xf32>
    %47 = vector.broadcast %45 : vector<1x128xf32> to vector<32x128xf32>
    %48 = arith.cmpf olt, %46, %47 : vector<32x128xf32>
    %cst_12 = arith.constant 0.000000e+00 : f32
    %49 = vector.broadcast %cst_12 : f32 to vector<32x128xf32>
    %50 = arith.select %48, %26, %49 : vector<32x128xi1>, vector<32x128xf32>
    %51 = vector.extract_strided_slice %50 {offsets = [0, 0], sizes = [16, 128], strides = [1, 1]} : vector<32x128xf32> to vector<16x128xf32>
    %cst_13 = arith.constant dense<0xFF800000> : vector<128xf32>
    %52 = vector.multi_reduction <maximumf>, %51, %cst_13 [0] : vector<16x128xf32> to vector<128xf32>
    %53 = vector.shape_cast %52 : vector<128xf32> to vector<1x128xf32>
    %54 = vector.extract_strided_slice %50 {offsets = [16, 0], sizes = [16, 128], strides = [1, 1]} : vector<32x128xf32> to vector<16x128xf32>
    %cst_14 = arith.constant dense<0xFF800000> : vector<128xf32>
    %55 = vector.multi_reduction <maximumf>, %54, %cst_14 [0] : vector<16x128xf32> to vector<128xf32>
    %56 = vector.shape_cast %55 : vector<128xf32> to vector<1x128xf32>
    %57 = tpu.concatenate %53, %56 in 0 : vector<1x128xf32>, vector<1x128xf32> -> vector<2x128xf32>
    %c128 = arith.constant 128 : index
    %c0_15 = arith.constant 0 : index
    %58 = vector.load %arg1[%c128, %c0_15] : memref<320x128xbf16, #tpu.memory_space<vmem>>, vector<128x128xbf16>
    %59 = arith.truncf %57 : vector<2x128xf32> to vector<2x128xbf16>
    %cst_16 = arith.constant dense<0.000000e+00> : vector<2x128xf32>
    %60 = tpu.matmul %59, %58, %cst_16 {dimension_numbers = #tpu.dot_dimension_numbers<[1], [0], [0], [1], [0, 0, 1, 1], [], []>} : vector<2x128xbf16>, vector<128x128xbf16>, vector<2x128xf32> -> vector<2x128xf32>
    %c2 = arith.constant 2 : index
    %c0_17 = arith.constant 0 : index
    %61 = vector.load %arg2[%c2, %c0_17] : memref<8x128xf32, #tpu.memory_space<vmem>>, vector<1x128xf32>
    %62 = vector.broadcast %61 : vector<1x128xf32> to vector<2x128xf32>
    %63 = arith.addf %60, %62 : vector<2x128xf32>
    %64 = vector.extract_strided_slice %63 {offsets = [0, 0], sizes = [2, 4], strides = [1, 1]} : vector<2x128xf32> to vector<2x4xf32>
    %c0_18 = arith.constant 0 : index
    %c0_19 = arith.constant 0 : index
    %65 = vector.load %arg3[%c0_18, %c0_19] : memref<2x4xf32, #tpu.memory_space<vmem>>, vector<2x4xf32>
    tpu.vector_store %arg3[%c0_18, %c0_19], %64 {strides = array<i32>} : memref<2x4xf32, #tpu.memory_space<vmem>>, vector<2x4xf32>,
    return
  }
}

</mosaic_0001>

<bundles_post_ra>
// kernel: textcnn_forward.1
= control target key start
LH: loop header
LB: loop body
LE: loop exit
PB: predicated region body
PF: predicated region fallthrough
CT: control target
= control target key end

     0   :  { %8 = vsyncpa [#allocation3], 0  ;;  %s925_s0 = inlined_call_operand.vmem [shape: s32[32,1], index: 0, kind: input, shape index: {}]   ;;  %s926_s1 = inlined_call_operand.hbm [shape: bf16[320,128], index: 1, kind: input, shape index: {}]   ;;  %s927_s2 = inlined_call_operand.vmem [shape: f32[8,128], index: 2, kind: input, shape index: {}]   ;;  %s928_s3 = inlined_call_operand.hbm [shape: f32[2,4], index: 3, kind: output, shape index: {}]  }
   0x1   :  { %9 = vsyncpa [#allocation4], 0  ;;  %s792_s12 = smov [#allocation2]   ;;  %s744_s16 = scalar_lea.hbm %s926_s1, 2560 }
   0x2   :  { %s17_s13 = sshll.u32 %s792_s12, 4  ;;  %p745_p0 = scmp.ne.s32.totalorder %s926_s1, %s744_s16  ;;  %s18_s13 = int_to_ptr.vmem [resolvable:$true] %s17_s13 }
   0x3   :  { %p748_p1 = scmp.lt.u32.totalorder %s744_s16, %s926_s1 }
   0x5   :  { %p750_p2 = pnand %p748_p1, %p745_p0 }
   0x7   :  { %753 = shalt.err (!%p750_p2)
}
   0x8   :  { %s754_s21 = scalar_lea.vmem %s18_s13, 2560  ;;  %p759_p4 = scmp.lt.s32.totalorder %s18_s13, %s18_s13 }
   0x9   :  { %p755_p3 = scmp.ne.s32.totalorder %s18_s13, %s754_s21  ;;  %p760_p5 = scmp.lt.s32.totalorder %s754_s21, %s754_s21 }
   0xb   :  { %p761_p6 = por %p760_p5, %p759_p4 }
   0xd   :  { %p762_p7 = pnand %p761_p6, %p755_p3 }
   0xf   :  { %765 = shalt.err (!%p762_p7)
}
  0x10   :  { %s793_s22 = smov 64   ;;  %s794_s23 = smov 4  }
  0x11   :  { %23 = dma.hbm_to_vmem [thread:$0]  %s926_s1, 2560, %s18_s13, [#allocation3], %s793_s22, %s793_s22, %s794_s23  }
  0x12   :  { %788 = dma.done.wait [#allocation3], 2560  }
  0x13   :  { %789 = vsyncadd [#allocation3], 4294964736  ;;  %v795_v0 = vmov 0   ;;  %v32_v1 = vld [vmem:[%s925_s0 + $0x10] sm:$0xff]  ;;  %v30_v2 = vld [vmem:[%s925_s0] sm:$0xff]  ;;  %v796_v9 = vmov 0.0   ;;  %v34_v10 = vlaneseq }
  0x14   :  { %693 = vset.pattern.permute.xlu1 %v795_v0  ;;  %692 = vset.pattern.permute.xlu0 %v795_v0  ;;  %v33_v3 = vld [vmem:[%s925_s0 + $0x18] sm:$0xff]  ;;  %v31_v4 = vld [vmem:[%s925_s0 + $0x8] sm:$0xff]  ;;  %v725_v6 = vld [vmem:[#allocation2 + $0x88] sm:$0xff]   ;;  %vm94_vm4 = vcmask 523264   ;;  %vm154_vm5 = vcmask 1046528   ;;  %vm165_vm6 = vcmask 1045504  }
  0x15   :  { %43 = vperm.xlu1 %693, %v32_v1   ;;  %37 = vperm.xlu0 %692, %v30_v2   ;;  %v724_v5 = vld [vmem:[#allocation2 + $0x80] sm:$0xff]   ;;  %v726_v7 = vld [vmem:[#allocation2 + $0x90] sm:$0xff]   ;;  %v727_v8 = vld [vmem:[#allocation2 + $0x98] sm:$0xff]   ;;  %v35_v11 = vand.u32 127, %v34_v10  ;;  %vm176_vm7 = vcmask 1044480   ;;  %s797_s0 = smov 32  }
  0x16   :  { %631 = vmatprep.subr.bf16.mxu0 %v724_v5  ;;  %v728_v22 = vld [vmem:[#allocation2] sm:$0xff]   ;;  %v729_v23 = vld [vmem:[#allocation2 + $0x8] sm:$0xff]   ;;  %v730_v24 = vld [vmem:[#allocation2 + $0x10] sm:$0xff]   ;;  %s798_s6 = smov 96   ;;  %vm226_vm8 = vcmask 261120   ;;  %vm235_vm9 = vcmask 785408  }
  0x17   :  { %632 = vmatpush3.bf16.msra.mxu0 %v724_v5  ;;  %643 = vmatprep.subr.bf16.mxu1 %v728_v22  ;;  %v731_v25 = vld [vmem:[#allocation2 + $0x18] sm:$0xff]   ;;  %v732_v26 = vld [vmem:[#allocation2 + $0x20] sm:$0xff]   ;;  %v733_v27 = vld [vmem:[#allocation2 + $0x28] sm:$0xff]   ;;  %vm799_vm10 = vmmov 0   ;;  %vm448_vm15 = vcmask 1040384   ;;  %s800_s13 = smov [#allocation5]  }
  0x18   :  { %633 = vmatprep.subr.bf16.mxu0 %v725_v6  ;;  %644 = vmatpush3.bf16.msra.mxu1 %v728_v22  ;;  %v734_v30 = vld [vmem:[#allocation2 + $0x30] sm:$0xff]   ;;  %v735_v45 = vld [vmem:[#allocation2 + $0x38] sm:$0xff]   ;;  %v736_v0 = vld [vmem:[#allocation2 + $0x40] sm:$0xff]   ;;  %s568_s14 = sshll.u32 %s800_s13, 4  ;;  %s569_s14 = int_to_ptr.vmem [resolvable:$true] %s568_s14 }
  0x19   :  { %46 = vperm.xlu1 %693, %v33_v3   ;;  %40 = vperm.xlu0 %692, %v31_v4   ;;  %v737_v1 = vld [vmem:[#allocation2 + $0x48] sm:$0xff]   ;;  %s766_s15 = scalar_lea.vmem %s569_s14, 32  ;;  %p771_p9 = scmp.lt.s32.totalorder %s569_s14, %s569_s14 }
  0x1a   :  { %645 = vmatprep.subr.bf16.mxu1 %v729_v23  ;;  %p767_p8 = scmp.ne.s32.totalorder %s569_s14, %s766_s15  ;;  %p772_p10 = scmp.lt.s32.totalorder %s766_s15, %s766_s15 }
  0x1b   :  { %634 = vmatpush3.bf16.msra.mxu0 %v725_v6 }
  0x1c   :  { %635 = vmatprep.subr.bf16.mxu0 %v726_v7  ;;  %646 = vmatpush3.bf16.msra.mxu1 %v729_v23  ;;  %p773_p11 = por %p772_p10, %p771_p9 }
  0x1d   :  { %647 = vmatprep.subr.bf16.mxu1 %v730_v24 }
  0x1e   :  { %p774_p12 = pnand %p773_p11, %p767_p8 }
  0x1f   :  { %636 = vmatpush3.bf16.msra.mxu0 %v726_v7 }
  0x20   :  { %637 = vmatprep.subr.bf16.mxu0 %v727_v8  ;;  %648 = vmatpush3.bf16.msra.mxu1 %v730_v24 }
  0x21   :  { %649 = vmatprep.subr.bf16.mxu1 %v731_v25 }
  0x23   :  { %638 = vmatpush3.bf16.msra.mxu0 %v727_v8 }
  0x24   :  { %663 = vmatprep.subr.bf16.mxu0 %v796_v9  ;;  %650 = vmatpush3.bf16.msra.mxu1 %v731_v25 }
  0x25   :  { %651 = vmatprep.subr.bf16.mxu1 %v732_v26 }
  0x28   :  { %652 = vmatpush3.bf16.msra.mxu1 %v732_v26 }
  0x29   :  { %653 = vmatprep.subr.bf16.mxu1 %v733_v27 }
  0x2c   :  { %654 = vmatpush3.bf16.msra.mxu1 %v733_v27 }
  0x2d   :  { %655 = vmatprep.subr.bf16.mxu1 %v734_v30 }
  0x30   :  { %656 = vmatpush3.bf16.msra.mxu1 %v734_v30 }
  0x31   :  { %657 = vmatprep.subr.bf16.mxu1 %v735_v45 }
  0x34   :  { %658 = vmatpush3.bf16.msra.mxu1 %v735_v45 }
  0x94   :  { %v44_v12 = vpop.permute.xlu1 %43  ;;  %v38_v13 = vpop.permute.xlu0 %37 }
  0x95   :  { %vm50_vm0 = vcmp.eq.s32.totalorder %v44_v12, %v35_v11  ;;  %vm48_vm1 = vcmp.eq.s32.totalorder %v38_v13, %v35_v11 }
  0x96   :  { %v579_v16 = vsel %vm50_vm0, 1.0, %v796_v9  ;;  %v577_v17 = vsel %vm48_vm1, 1.0, %v796_v9  ;;  %vm560_vm0 = vcmask 25600  }
  0x98   :  { %v47_v14 = vpop.permute.xlu1 %46  ;;  %v41_v15 = vpop.permute.xlu0 %40 }
  0x99   :  { %vm51_vm2 = vcmp.eq.s32.totalorder %v47_v14, %v35_v11  ;;  %vm49_vm3 = vcmp.eq.s32.totalorder %v41_v15, %v35_v11 }
  0x9a   :  { %v580_v18 = vsel %vm51_vm2, 1.0, %v796_v9  ;;  %v578_v19 = vsel %vm49_vm3, 1.0, %v796_v9 }
  0x9b   :  { %v61_v20 = vpack.c.bf16 %v580_v18, %v579_v16  ;;  %v60_v21 = vpack.c.bf16 %v578_v19, %v577_v17 }
  0x9d   :  { %639 = vmatprep.mubr.msk.bf16.mxu0 %vm94_vm4, %v60_v21 }
  0x9e   :  { %640 = vmatmul.mubr.msk.bf16.vlgmr.msra.gmra.mrb[0].mxu0 %vm94_vm4, %v61_v20 }
  0x9f   :  { %664 = vmatpush3.bf16.msra.mxu0 %v736_v0  ;;  %679 = vmatprep.mubr.msk.bf16.mxu0 %vm799_vm10, %v796_v9 }
  0xa0   :  { %665 = vmatprep.subr.bf16.mxu0 %v796_v9 }
  0xa3   :  { %666 = vmatpush3.bf16.msra.mxu0 %v737_v1 }
  0xa4   :  { %667 = vmatprep.subr.bf16.mxu0 %v796_v9 }
 0x171   :  { %v855_v28 = vpop.f32.mrb[0].mxu0 }
 0x172   :  { %v857_v29 = vpop.f32.mrb[1].mxu0  ;;  %v158_v31 = vrot.slane %v855_v28, 1  ;;  %v169_v32 = vrot.slane %v855_v28, 2  ;;  %v180_v36 = vrot.slane %v855_v28, 3 }
 0x173   :  { %v155_v33 = vrot.slane %v857_v29, 1  ;;  %v166_v34 = vrot.slane %v857_v29, 2  ;;  %v642_v35 = vpop.f32.mrb[2].mxu0  ;;  %v177_v41 = vrot.slane %v857_v29, 3 }
 0x174   :  { %v160_v37 = vrot.slane %v642_v35, 1  ;;  %v171_v38 = vrot.slane %v642_v35, 2  ;;  %v182_v39 = vrot.slane %v642_v35, 3  ;;  %v864_v40 = vpop.f32.mrb[3].mxu0 }
 0x175   :  { %v156_v42 = vrot.slane %v864_v40, 1  ;;  %v167_v43 = vrot.slane %v864_v40, 2  ;;  %v178_v44 = vrot.slane %v864_v40, 3 }
 0x176   :  { %v161_v46 = vsel %vm154_vm5, %v158_v31, %v160_v37  ;;  %v164_v47 = vsel %vm154_vm5, %v160_v37, %v155_v33  ;;  %v172_v48 = vsel %vm165_vm6, %v169_v32, %v171_v38  ;;  %v175_v49 = vsel %vm165_vm6, %v171_v38, %v166_v34  ;;  %v739_v37 = vld [vmem:[#allocation2 + $0x58] sm:$0xff]   ;;  %v740_v38 = vld [vmem:[#allocation2 + $0x60] sm:$0xff]  }
 0x177   :  { %v694_v50 = vpack.i.bf16 %v164_v47, %v161_v46  ;;  %v157_v51 = vsel %vm154_vm5, %v155_v33, %v156_v42  ;;  %v159_v52 = vsel %vm154_vm5, %v156_v42, %v158_v31  ;;  %v699_v53 = vpack.i.bf16 %v175_v49, %v172_v48 }
 0x178   :  { %v704_v54 = vpack.i.bf16 %v159_v52, %v157_v51  ;;  %v168_v55 = vsel %vm165_vm6, %v166_v34, %v167_v43  ;;  %v170_v56 = vsel %vm165_vm6, %v167_v43, %v169_v32  ;;  %v183_v57 = vsel %vm176_vm7, %v180_v36, %v182_v39  ;;  %v596_v52 = vld [vmem:[%s927_s2 + $0x1] ss:$0 sm:$0xff] }
 0x179   :  { %695 = vrot.lane.b32.xlu1 %v694_v50, %s797_s0  ;;  %v709_v58 = vpack.i.bf16 %v170_v56, %v168_v55  ;;  %v186_v59 = vsel %vm176_vm7, %v182_v39, %v177_v41  ;;  %v179_v60 = vsel %vm176_vm7, %v177_v41, %v178_v44  ;;  %v181_v61 = vsel %vm176_vm7, %v178_v44, %v180_v36  ;;  %v741_v39 = vld [vmem:[#allocation2 + $0x68] sm:$0xff]   ;;  %v743_v41 = vld [vmem:[#allocation2 + $0x78] sm:$0xff]  }
 0x17a   :  { %705 = vrot.lane.b32.xlu0 %v704_v54, %s797_s0  ;;  %v719_v62 = vpack.i.bf16 %v186_v59, %v183_v57  ;;  %v714_v63 = vpack.i.bf16 %v181_v61, %v179_v60  ;;  %v365_v42 = vshrl.u32 %v34_v10, 7  ;;  %v587_v50 = vld [vmem:[%s927_s2] ss:$0 sm:$0xff] }
 0x17c   :  { %v367_v43 = vadd.s32 16, %v365_v42  ;;  %v368_v44 = vadd.s32 24, %v365_v42  ;;  %v366_v45 = vadd.s32 8, %v365_v42  ;;  %v373_v47 = vand.u32 15, %v365_v42 }
 0x17d   :  { %700 = vrot.lane.b32.xlu1 %v699_v53, %s793_s22 }
 0x17e   :  { %710 = vrot.lane.b32.xlu0 %v709_v58, %s793_s22  ;;  %v387_v46 = vand.u32 15, %v367_v43  ;;  %v394_v48 = vand.u32 15, %v368_v44  ;;  %v380_v49 = vand.u32 15, %v366_v45 }
 0x180   :  { %v419_v51 = vcvt.s32.f32 %v387_v46  ;;  %v420_v54 = vcvt.s32.f32 %v394_v48  ;;  %v418_v56 = vcvt.s32.f32 %v380_v49 }
 0x181   :  { %720 = vrot.lane.b32.xlu1 %v719_v62, %s798_s6 }
 0x182   :  { %715 = vrot.lane.b32.xlu0 %v714_v63, %s798_s6  ;;  %vm428_vm11 = vcmp.lt.f32.partialorder %v419_v51, %v596_v52  ;;  %vm429_vm13 = vcmp.lt.f32.partialorder %v420_v54, %v596_v52  ;;  %vm427_vm14 = vcmp.lt.f32.partialorder %v418_v56, %v596_v52 }
 0x1eb   :  { %v696_v2 = vpop.permute.xlu1 %695 }
 0x1ec   :  { %v706_v3 = vpop.permute.xlu0 %705  ;;  %v698_v4 = vunpack.i.h.bf16 %v696_v2  ;;  %v697_v5 = vunpack.i.l.bf16 %v696_v2 }
 0x1ed   :  { %v708_v7 = vunpack.i.h.bf16 %v706_v3  ;;  %v707_v8 = vunpack.i.l.bf16 %v706_v3 }
 0x1ee   :  { %v230_v16 = vsel %vm226_vm8, %v642_v35, %v698_v4  ;;  %v229_v17 = vsel %vm226_vm8, %v855_v28, %v697_v5 }
 0x1ef   :  { %v701_v6 = vpop.permute.xlu1 %700  ;;  %v227_v22 = vsel %vm226_vm8, %v857_v29, %v707_v8  ;;  %v228_v23 = vsel %vm226_vm8, %v864_v40, %v708_v7  ;;  %v738_v29 = vld [vmem:[#allocation2 + $0x50] sm:$0xff]  }
 0x1f0   :  { %v711_v11 = vpop.permute.xlu0 %710  ;;  %v703_v12 = vunpack.i.h.bf16 %v701_v6  ;;  %v702_v13 = vunpack.i.l.bf16 %v701_v6  ;;  %668 = vmatpush3.bf16.msra.mxu0 %v738_v29  ;;  %v742_v40 = vld [vmem:[#allocation2 + $0x70] sm:$0xff]  }
 0x1f1   :  { %v713_v14 = vunpack.i.h.bf16 %v711_v11  ;;  %v712_v15 = vunpack.i.l.bf16 %v711_v11  ;;  %669 = vmatprep.subr.bf16.mxu0 %v796_v9 }
 0x1f2   :  { %v233_v24 = vsel %vm94_vm4, %v229_v17, %v702_v13  ;;  %v234_v25 = vsel %vm94_vm4, %v230_v16, %v703_v12 }
 0x1f3   :  { %v721_v18 = vpop.permute.xlu1 %720  ;;  %v231_v30 = vsel %vm94_vm4, %v227_v22, %v712_v15  ;;  %v232_v28 = vsel %vm94_vm4, %v228_v23, %v713_v14 }
 0x1f4   :  { %v723_v19 = vunpack.i.h.bf16 %v721_v18  ;;  %v722_v20 = vunpack.i.l.bf16 %v721_v18  ;;  %v716_v21 = vpop.permute.xlu0 %715  ;;  %670 = vmatpush3.bf16.msra.mxu0 %v739_v37 }
 0x1f5   :  { %v718_v26 = vunpack.i.h.bf16 %v716_v21  ;;  %v717_v27 = vunpack.i.l.bf16 %v716_v21  ;;  %671 = vmatprep.subr.bf16.mxu0 %v796_v9 }
 0x1f6   :  { %v238_v31 = vsel %vm235_vm9, %v233_v24, %v722_v20  ;;  %v239_v32 = vsel %vm235_vm9, %v234_v25, %v723_v19  ;;  %v597_v24 = vld [vmem:[%s927_s2 + $0x2] ss:$0 sm:$0xff] }
 0x1f7   :  { %v236_v33 = vsel %vm235_vm9, %v231_v30, %v717_v27  ;;  %v237_v34 = vsel %vm235_vm9, %v232_v28, %v718_v26  ;;  %v241_v35 = vpack.c.bf16 %v239_v32, %v238_v31 }
 0x1f8   :  { %v240_v36 = vpack.c.bf16 %v237_v34, %v236_v33  ;;  %672 = vmatpush3.bf16.msra.mxu0 %v740_v38 }
 0x1f9   :  { %673 = vmatprep.subr.bf16.mxu0 %v796_v9 }
 0x1fa   :  { %659 = vmatprep.mubr.bf16.mxu1 %v240_v36 }
 0x1fb   :  { %660 = vmatmul.mubr.bf16.vlgmr.msra.gmra.mrb[0].mxu1 %v241_v35 }
 0x1fc   :  { %674 = vmatpush3.bf16.msra.mxu0 %v741_v39 }
 0x1fd   :  { %675 = vmatprep.subr.bf16.mxu0 %v796_v9 }
 0x200   :  { %676 = vmatpush3.bf16.msra.mxu0 %v742_v40 }
 0x201   :  { %677 = vmatprep.subr.bf16.mxu0 %v796_v9  ;;  %v417_v9 = vcvt.s32.f32 %v373_v47 }
 0x203   :  { %vm426_vm12 = vcmp.lt.f32.partialorder %v417_v9, %v596_v52 }
 0x204   :  { %678 = vmatpush3.bf16.msra.mxu0 %v743_v41 }
 0x2ce   :  { %v661_v53 = vpop.f32.mrb[0].mxu1 }
 0x2cf   :  { %v354_v10 = vadd.f32 %v661_v53, %v587_v50  ;;  %v345_v55 = vpop.f32.mrb[1].mxu1 }
 0x2d0   :  { %v346_v57 = vadd.f32 %v587_v50, %v345_v55  ;;  %v662_v58 = vpop.f32.mrb[2].mxu1 }
 0x2d1   :  { %v362_v59 = vmax.f32 %v354_v10, 0.0  ;;  %v357_v60 = vadd.f32 %v662_v58, %v587_v50  ;;  %v348_v61 = vpop.f32.mrb[3].mxu1 }
 0x2d2   :  { %v360_v62 = vmax.f32 %v346_v57, 0.0  ;;  %v349_v63 = vadd.f32 %v587_v50, %v348_v61 }
 0x2d3   :  { %v432_v0 = vsel %vm428_vm11, %v362_v59, 0.0  ;;  %v363_v1 = vmax.f32 %v357_v60, 0.0 }
 0x2d4   :  { %v430_v2 = vsel %vm426_vm12, %v360_v62, 0.0  ;;  %v361_v3 = vmax.f32 %v349_v63, 0.0 }
 0x2d5   :  { %v433_v4 = vsel %vm429_vm13, %v363_v1, 0.0 }
 0x2d6   :  { %v441_v5 = vmax.f32 %v432_v0, %v433_v4  ;;  %v431_v6 = vsel %vm427_vm14, %v361_v3, 0.0 }
 0x2d7   :  { %v434_v7 = vmax.f32 %v430_v2, %v431_v6 }
 0x2d8   :  { %v442_v8 = vrot.slane %v441_v5, 4 }
 0x2d9   :  { %v435_v11 = vrot.slane %v434_v7, 4 }
 0x2da   :  { %v443_v12 = vmax.f32 %v441_v5, %v442_v8 }
 0x2db   :  { %v436_v13 = vmax.f32 %v434_v7, %v435_v11 }
 0x2dc   :  { %v444_v14 = vrot.slane %v443_v12, 2 }
 0x2dd   :  { %v437_v15 = vrot.slane %v436_v13, 2 }
 0x2de   :  { %v445_v16 = vmax.f32 %v443_v12, %v444_v14 }
 0x2df   :  { %v438_v17 = vmax.f32 %v436_v13, %v437_v15 }
 0x2e0   :  { %v446_v18 = vrot.slane %v445_v16, 1 }
 0x2e1   :  { %v439_v19 = vrot.slane %v438_v17, 1 }
 0x2e2   :  { %v447_v20 = vmax.f32 %v445_v16, %v446_v18 }
 0x2e3   :  { %v440_v21 = vmax.f32 %v438_v17, %v439_v19 }
 0x2e5   :  { %v449_v22 = vsel %vm448_vm15, %v440_v21, %v447_v20 }
 0x2e6   :  { %v466_v23 = vpack.c.bf16 %v449_v22, %v449_v22 }
 0x2e8   :  { %680 = vmatmul.mubr.bf16.vlgmr.msra.gmra.mrb[4].mxu0 %v466_v23 }
 0x3bb   :  { %v554_v25 = vpop.f32.mrb[4].mxu0 }
 0x3bc   :  { %v555_v26 = vadd.f32 %v597_v24, %v554_v25  ;;  %v681_v27 = vpop.f32.mrb[5].mxu0 }
 0x3bd   :  { %v557_v30 = vpop.f32.mrb[6].mxu0 }
 0x3be   :  { %v682_v28 = vpop.f32.mrb[7].mxu0  ;;  %561 = vst.msk [vmem:[#allocation5] sm:$0x3] %vm560_vm0, %v555_v26 }
 0x3bf   :  { %777 = shalt.err (!%p774_p12)
}
 0x3c0   :  { %s778_s2 = scalar_lea.hbm %s928_s3, 32 }
 0x3c1   :  { %p779_p13 = scmp.ne.s32.totalorder %s928_s3, %s778_s2  ;;  %p782_p0 = scmp.lt.u32.totalorder %s778_s2, %s928_s3 }
 0x3c3   :  { %p784_p1 = pnand %p782_p0, %p779_p13 }
 0x3c5   :  { %787 = shalt.err (!%p784_p1)
}
 0x3c6   :  { %571 = dma.vmem_to_hbm [thread:$0]  %s569_s14, 32, %s928_s3, [#allocation4]  }
 0x3c7   :  { %790 = dma.done.wait [#allocation4], 32  }
 0x3c8   :  { %791 = vsyncadd [#allocation4], 4294967264 }
 0x3c9   :  { %575 = vsyncpa [#allocation3], 1 }
 0x3ca   :  { %576 = vsyncpa [#allocation4], 1 }

</bundles_post_ra>
